<compile_context>
chip_gen: v7x
topology: tpu7x:2x2x1
jax: 0.10.0
libtpu: 0.0.40
codegen_flags: <defaults>
</compile_context>

<pallas_src>
import jax
import jax.numpy as jnp
from jax.experimental import pallas as pl
from jax.experimental.pallas import tpu as pltpu


def _mlp_kernel(x_ref, w1_ref, b1_ref, w2_ref, b2_ref, w3_ref, b3_ref, o_ref):
    """One batch tile.

    x_ref : (TILE_B, IN)   VMEM
    w1_ref: (H1, IN)       VMEM   (PyTorch layout: (out, in)), resident
    b1_ref: (H1,)          SMEM
    w2_ref: (H2*H1,)       SMEM   (row-major flatten of (H2, H1))
    b2_ref: (H2,)          SMEM
    w3_ref: (OUT*H2,)      SMEM   (row-major flatten of (OUT, H2))
    b3_ref: (OUT,)         SMEM
    o_ref : (OUT, TILE_B)  VMEM   (feature-major -> lane-dense stores)
    """
    h1_n = w1_ref.shape[0]
    h2_n = b2_ref.shape[0]
    out_n = b3_ref.shape[0]

    # ---- Layer 1 on the MXU, directly in the transposed (feature-major) layout:
    #      h1[j, b] = sum_k w1[j, k] * x[b, k]
    # TODO(synk): if profiling at large input_dim shows XLU saturation from
    # transposing the big x tile, do this dot batch-major and transpose only
    # the (TILE_B, H1) result with pltpu.einshape.
    h1 = jax.lax.dot_general(
        w1_ref[...], x_ref[...],
        dimension_numbers=(((1,), (1,)), ((), ())),
        preferred_element_type=jnp.float32,
        precision=jax.lax.Precision.HIGHEST,
    )                                                  # (H1, TILE_B) f32

    # bias + ReLU per row; b1 scalars come from SMEM (broadcast over lanes).
    h1_rows = [
        jnp.maximum(h1[k:k + 1, :] + b1_ref[k], 0.0) for k in range(h1_n)
    ]

    # ---- Layer 2 (K = H1 = 4): scalar-broadcast FMAs on the VPU — cheaper than
    # chained tiny MXU dots, and free filler under the x-tile DMA.
    h2_rows = []
    for j in range(h2_n):
        acc = h1_rows[0] * w2_ref[j * h1_n]
        for k in range(1, h1_n):
            acc = acc + h1_rows[k] * w2_ref[j * h1_n + k]
        h2_rows.append(jnp.maximum(acc + b2_ref[j], 0.0))

    # ---- Layer 3 (K = H2 = 2): write each output row straight into o_ref
    # (lane-dense, no concatenate, vregs released row by row).
    for j in range(out_n):
        acc = h2_rows[0] * w3_ref[j * h2_n]
        for k in range(1, h2_n):
            acc = acc + h2_rows[k] * w3_ref[j * h2_n + k]
        o_ref[j:j + 1, :] = (acc + b3_ref[j]).astype(o_ref.dtype)


def _round_up(x, m):
    return ((x + m - 1) // m) * m


def _plan(batch, in_dim, h1_n, h2_n, out_n, itemsize):
    """Byte-budget batch tile + VMEM limit + dimension semantics per chip."""
    kind = jax.devices()[0].device_kind.lower()
    is_v7 = ("v7" in kind) or ("tpu7" in kind)
    if is_v7:
        target_x_bytes = 8 << 20      # 3.2 TB/s HBM: bigger tiles to amortize
        vmem_cap = 56 << 20           # 64 MiB physical per TC on v7x
    elif "v5" in kind:
        target_x_bytes = 3 << 20      # v5e scoped-VMEM default is only 16 MiB
        vmem_cap = 100 << 20
    else:                             # v6e / v4 / default
        target_x_bytes = 4 << 20
        vmem_cap = 100 << 20

    row_bytes = in_dim * itemsize
    tile_b = _round_up(max(target_x_bytes // row_bytes, 1), 128)
    tile_b = max(128, min(tile_b, _round_up(batch, 128)))

    # VMEM footprint: double-buffered x & out tiles, resident w1, f32 temps.
    need = (2 * tile_b * row_bytes
            + 2 * out_n * tile_b * 4
            + 2 * h1_n * row_bytes
            + (h1_n + h2_n + 2) * tile_b * 4)
    vmem_limit = int(min(vmem_cap, max(32 << 20, need + (8 << 20))))

    dim_sem = (pltpu.CORE_PARALLEL,) if is_v7 else ("parallel",)
    return tile_b, vmem_limit, dim_sem


@jax.jit
def nn_forward(x, params):
    """Forward pass of NN. x: (batch, input_dim).
    params: (w1, b1, w2, b2, w3, b3) with PyTorch layouts w:(out,in), b:(out,).
    Returns (batch, output_dim) f32."""
    w1, b1, w2, b2, w3, b3 = params
    batch, in_dim = x.shape
    h1_n = w1.shape[0]
    h2_n = w2.shape[0]
    out_n = w3.shape[0]

    tile_b, vmem_limit, dim_sem = _plan(
        batch, in_dim, h1_n, h2_n, out_n, x.dtype.itemsize
    )
    grid = (pl.cdiv(batch, tile_b),)

    param_bytes = 4 * (w1.size + b1.size + w2.size + b2.size + w3.size + b3.size)
    cost = pl.CostEstimate(
        flops=2 * batch * (in_dim * h1_n + h1_n * h2_n + h2_n * out_n),
        transcendentals=0,
        bytes_accessed=x.dtype.itemsize * batch * in_dim
        + 4 * out_n * batch
        + param_bytes,
    )

    out_t = pl.pallas_call(
        _mlp_kernel,
        out_shape=jax.ShapeDtypeStruct((out_n, batch), jnp.float32),
        grid=grid,
        in_specs=[
            # x: tiled over batch; auto double-buffered by Pallas. The last
            # (partial) block may read unspecified OOB rows — safe because the
            # corresponding output columns are masked on writeback.
            pl.BlockSpec((tile_b, in_dim), lambda i: (i, 0)),
            # layer-1 weight: constant index_map -> loaded once, stays resident.
            pl.BlockSpec((h1_n, in_dim), lambda i: (0, 0)),
            # tiny biases / layer-2/3 params as scalars in SMEM.
            pl.BlockSpec(memory_space=pltpu.MemorySpace.SMEM),  # b1
            pl.BlockSpec(memory_space=pltpu.MemorySpace.SMEM),  # w2 flat
            pl.BlockSpec(memory_space=pltpu.MemorySpace.SMEM),  # b2
            pl.BlockSpec(memory_space=pltpu.MemorySpace.SMEM),  # w3 flat
            pl.BlockSpec(memory_space=pltpu.MemorySpace.SMEM),  # b3
        ],
        out_specs=pl.BlockSpec((out_n, tile_b), lambda i: (0, i)),
        compiler_params=pltpu.CompilerParams(
            dimension_semantics=dim_sem,
            vmem_limit_bytes=vmem_limit,
        ),
        cost_estimate=cost,
    )(
        x,
        w1,
        b1,
        w2.reshape(-1),
        b2,
        w3.reshape(-1),
        b3,
    )
    # Back to (batch, out_dim); the output is small, this transpose is layout
    # plumbing outside the kernel.
    return out_t.T


def init_params(key, input_dim, output_dim):
    """PyTorch nn.Linear-style init: U(-1/sqrt(fan_in), 1/sqrt(fan_in)),
    weights stored as (out_features, in_features), biases as (out_features,)."""
    dims = [(input_dim, 4), (4, 2), (2, output_dim)]
    params = []
    for fan_in, fan_out in dims:
        key, kw, kb = jax.random.split(key, 3)
        bound = 1.0 / (fan_in ** 0.5)
        w = jax.random.uniform(kw, (fan_out, fan_in), jnp.float32, -bound, bound)
        b = jax.random.uniform(kb, (fan_out,), jnp.float32, -bound, bound)
        params += [w, b]
    return tuple(params)


def _reference(x, params):
    w1, b1, w2, b2, w3, b3 = params
    hi = jax.lax.Precision.HIGHEST
    h = jnp.maximum(jnp.dot(x, w1.T, precision=hi) + b1, 0.0)
    h = jnp.maximum(jnp.dot(h, w2.T, precision=hi) + b2, 0.0)
    return jnp.dot(h, w3.T, precision=hi) + b3


if __name__ == "__main__":
    key = jax.random.PRNGKey(0)
    batch, input_dim, output_dim = 8, 16, 4

    kx, kp = jax.random.split(key)
    x = jax.random.normal(kx, (batch, input_dim), jnp.float32)
    params = init_params(kp, input_dim, output_dim)

    out = jax.block_until_ready(nn_forward(x, params))

    ref = _reference(x, params)
    assert out.shape == (batch, output_dim)
    assert jnp.allclose(out, ref, atol=1e-4, rtol=1e-4), float(
        jnp.max(jnp.abs(out - ref))
    )
    print("KERNEL_OK")
</pallas_src>

<mosaic_0001>
module attributes {stable_mosaic.version = 11 : i64} {
  func.func @_mlp_kernel(%arg0: i32, %arg1: memref<128x16xf32, #tpu.memory_space<vmem>>, %arg2: memref<4x16xf32, #tpu.memory_space<vmem>>, %arg3: memref<4xf32, #tpu.memory_space<smem>>, %arg4: memref<8xf32, #tpu.memory_space<smem>>, %arg5: memref<2xf32, #tpu.memory_space<smem>>, %arg6: memref<8xf32, #tpu.memory_space<smem>>, %arg7: memref<4xf32, #tpu.memory_space<smem>>, %arg8: memref<4x128xf32, #tpu.memory_space<vmem>>) attributes {dimension_semantics = [#tpu.dimension_semantics<parallel>], iteration_bounds = array<i64: 1>, scalar_prefetch = 0 : i64, scratch_operands = 0 : i64, tpu.core_type = #tpu.core_type<tc>, window_params = [{transform_indices = @transform_0, window_bounds = array<i64: 128, 16>}, {pipeline_mode = #tpu.pipeline_mode<synchronous>, transform_indices = @transform_1, window_bounds = array<i64: 4, 16>}, {transform_indices = @transform_2, window_bounds = array<i64: 4>}, {transform_indices = @transform_3, window_bounds = array<i64: 8>}, {transform_indices = @transform_4, window_bounds = array<i64: 2>}, {transform_indices = @transform_5, window_bounds = array<i64: 8>}, {transform_indices = @transform_6, window_bounds = array<i64: 4>}, {transform_indices = @transform_7, window_bounds = array<i64: 4, 128>}]} {
    %c0 = arith.constant 0 : index
    %c0_0 = arith.constant 0 : index
    %0 = vector.load %arg2[%c0, %c0_0] : memref<4x16xf32, #tpu.memory_space<vmem>>, vector<4x16xf32>
    %c0_1 = arith.constant 0 : index
    %c0_2 = arith.constant 0 : index
    %1 = vector.load %arg1[%c0_1, %c0_2] : memref<128x16xf32, #tpu.memory_space<vmem>>, vector<128x16xf32>
    %cst = arith.constant dense<0.000000e+00> : vector<4x128xf32>
    %2 = tpu.matmul %0, %1, %cst {dimension_numbers = #tpu.dot_dimension_numbers<[1], [1], [0], [0], [0, 0, 1, 0], [], []>, precision = #tpu.contract_precision<fp32>} : vector<4x16xf32>, vector<128x16xf32>, vector<4x128xf32> -> vector<4x128xf32>
    %3 = vector.extract_strided_slice %2 {offsets = [0, 0], sizes = [1, 128], strides = [1, 1]} : vector<4x128xf32> to vector<1x128xf32>
    %c0_3 = arith.constant 0 : index
    %4 = memref.load %arg3[%c0_3] : memref<4xf32, #tpu.memory_space<smem>>
    %5 = vector.broadcast %4 : f32 to vector<1x128xf32>
    %6 = arith.addf %3, %5 : vector<1x128xf32>
    %cst_4 = arith.constant 0.000000e+00 : f32
    %7 = vector.broadcast %cst_4 : f32 to vector<1x128xf32>
    %8 = arith.maximumf %6, %7 : vector<1x128xf32>
    %9 = vector.extract_strided_slice %2 {offsets = [1, 0], sizes = [1, 128], strides = [1, 1]} : vector<4x128xf32> to vector<1x128xf32>
    %c1 = arith.constant 1 : index
    %10 = memref.load %arg3[%c1] : memref<4xf32, #tpu.memory_space<smem>>
    %11 = vector.broadcast %10 : f32 to vector<1x128xf32>
    %12 = arith.addf %9, %11 : vector<1x128xf32>
    %cst_5 = arith.constant 0.000000e+00 : f32
    %13 = vector.broadcast %cst_5 : f32 to vector<1x128xf32>
    %14 = arith.maximumf %12, %13 : vector<1x128xf32>
    %15 = vector.extract_strided_slice %2 {offsets = [2, 0], sizes = [1, 128], strides = [1, 1]} : vector<4x128xf32> to vector<1x128xf32>
    %c2 = arith.constant 2 : index
    %16 = memref.load %arg3[%c2] : memref<4xf32, #tpu.memory_space<smem>>
    %17 = vector.broadcast %16 : f32 to vector<1x128xf32>
    %18 = arith.addf %15, %17 : vector<1x128xf32>
    %cst_6 = arith.constant 0.000000e+00 : f32
    %19 = vector.broadcast %cst_6 : f32 to vector<1x128xf32>
    %20 = arith.maximumf %18, %19 : vector<1x128xf32>
    %21 = vector.extract_strided_slice %2 {offsets = [3, 0], sizes = [1, 128], strides = [1, 1]} : vector<4x128xf32> to vector<1x128xf32>
    %c3 = arith.constant 3 : index
    %22 = memref.load %arg3[%c3] : memref<4xf32, #tpu.memory_space<smem>>
    %23 = vector.broadcast %22 : f32 to vector<1x128xf32>
    %24 = arith.addf %21, %23 : vector<1x128xf32>
    %cst_7 = arith.constant 0.000000e+00 : f32
    %25 = vector.broadcast %cst_7 : f32 to vector<1x128xf32>
    %26 = arith.maximumf %24, %25 : vector<1x128xf32>
    %c0_8 = arith.constant 0 : index
    %27 = memref.load %arg4[%c0_8] : memref<8xf32, #tpu.memory_space<smem>>
    %28 = vector.broadcast %27 : f32 to vector<1x128xf32>
    %29 = arith.mulf %8, %28 : vector<1x128xf32>
    %c1_9 = arith.constant 1 : index
    %30 = memref.load %arg4[%c1_9] : memref<8xf32, #tpu.memory_space<smem>>
    %31 = vector.broadcast %30 : f32 to vector<1x128xf32>
    %32 = arith.mulf %14, %31 : vector<1x128xf32>
    %33 = arith.addf %29, %32 : vector<1x128xf32>
    %c2_10 = arith.constant 2 : index
    %34 = memref.load %arg4[%c2_10] : memref<8xf32, #tpu.memory_space<smem>>
    %35 = vector.broadcast %34 : f32 to vector<1x128xf32>
    %36 = arith.mulf %20, %35 : vector<1x128xf32>
    %37 = arith.addf %33, %36 : vector<1x128xf32>
    %c3_11 = arith.constant 3 : index
    %38 = memref.load %arg4[%c3_11] : memref<8xf32, #tpu.memory_space<smem>>
    %39 = vector.broadcast %38 : f32 to vector<1x128xf32>
    %40 = arith.mulf %26, %39 : vector<1x128xf32>
    %41 = arith.addf %37, %40 : vector<1x128xf32>
    %c0_12 = arith.constant 0 : index
    %42 = memref.load %arg5[%c0_12] : memref<2xf32, #tpu.memory_space<smem>>
    %43 = vector.broadcast %42 : f32 to vector<1x128xf32>
    %44 = arith.addf %41, %43 : vector<1x128xf32>
    %cst_13 = arith.constant 0.000000e+00 : f32
    %45 = vector.broadcast %cst_13 : f32 to vector<1x128xf32>
    %46 = arith.maximumf %44, %45 : vector<1x128xf32>
    %c4 = arith.constant 4 : index
    %47 = memref.load %arg4[%c4] : memref<8xf32, #tpu.memory_space<smem>>
    %48 = vector.broadcast %47 : f32 to vector<1x128xf32>
    %49 = arith.mulf %8, %48 : vector<1x128xf32>
    %c5 = arith.constant 5 : index
    %50 = memref.load %arg4[%c5] : memref<8xf32, #tpu.memory_space<smem>>
    %51 = vector.broadcast %50 : f32 to vector<1x128xf32>
    %52 = arith.mulf %14, %51 : vector<1x128xf32>
    %53 = arith.addf %49, %52 : vector<1x128xf32>
    %c6 = arith.constant 6 : index
    %54 = memref.load %arg4[%c6] : memref<8xf32, #tpu.memory_space<smem>>
    %55 = vector.broadcast %54 : f32 to vector<1x128xf32>
    %56 = arith.mulf %20, %55 : vector<1x128xf32>
    %57 = arith.addf %53, %56 : vector<1x128xf32>
    %c7 = arith.constant 7 : index
    %58 = memref.load %arg4[%c7] : memref<8xf32, #tpu.memory_space<smem>>
    %59 = vector.broadcast %58 : f32 to vector<1x128xf32>
    %60 = arith.mulf %26, %59 : vector<1x128xf32>
    %61 = arith.addf %57, %60 : vector<1x128xf32>
    %c1_14 = arith.constant 1 : index
    %62 = memref.load %arg5[%c1_14] : memref<2xf32, #tpu.memory_space<smem>>
    %63 = vector.broadcast %62 : f32 to vector<1x128xf32>
    %64 = arith.addf %61, %63 : vector<1x128xf32>
    %cst_15 = arith.constant 0.000000e+00 : f32
    %65 = vector.broadcast %cst_15 : f32 to vector<1x128xf32>
    %66 = arith.maximumf %64, %65 : vector<1x128xf32>
    %c0_16 = arith.constant 0 : index
    %67 = memref.load %arg6[%c0_16] : memref<8xf32, #tpu.memory_space<smem>>
    %68 = vector.broadcast %67 : f32 to vector<1x128xf32>
    %69 = arith.mulf %46, %68 : vector<1x128xf32>
    %c1_17 = arith.constant 1 : index
    %70 = memref.load %arg6[%c1_17] : memref<8xf32, #tpu.memory_space<smem>>
    %71 = vector.broadcast %70 : f32 to vector<1x128xf32>
    %72 = arith.mulf %66, %71 : vector<1x128xf32>
    %73 = arith.addf %69, %72 : vector<1x128xf32>
    %c0_18 = arith.constant 0 : index
    %74 = memref.load %arg7[%c0_18] : memref<4xf32, #tpu.memory_space<smem>>
    %75 = vector.broadcast %74 : f32 to vector<1x128xf32>
    %76 = arith.addf %73, %75 : vector<1x128xf32>
    %c0_19 = arith.constant 0 : index
    %c0_20 = arith.constant 0 : index
    %77 = vector.load %arg8[%c0_19, %c0_20] : memref<4x128xf32, #tpu.memory_space<vmem>>, vector<1x128xf32>
    tpu.vector_store %arg8[%c0_19, %c0_20], %76 {strides = array<i32>} : memref<4x128xf32, #tpu.memory_space<vmem>>, vector<1x128xf32>,
    %c2_21 = arith.constant 2 : index
    %78 = memref.load %arg6[%c2_21] : memref<8xf32, #tpu.memory_space<smem>>
    %79 = vector.broadcast %78 : f32 to vector<1x128xf32>
    %80 = arith.mulf %46, %79 : vector<1x128xf32>
    %c3_22 = arith.constant 3 : index
    %81 = memref.load %arg6[%c3_22] : memref<8xf32, #tpu.memory_space<smem>>
    %82 = vector.broadcast %81 : f32 to vector<1x128xf32>
    %83 = arith.mulf %66, %82 : vector<1x128xf32>
    %84 = arith.addf %80, %83 : vector<1x128xf32>
    %c1_23 = arith.constant 1 : index
    %85 = memref.load %arg7[%c1_23] : memref<4xf32, #tpu.memory_space<smem>>
    %86 = vector.broadcast %85 : f32 to vector<1x128xf32>
    %87 = arith.addf %84, %86 : vector<1x128xf32>
    %c1_24 = arith.constant 1 : index
    %c0_25 = arith.constant 0 : index
    %88 = vector.load %arg8[%c1_24, %c0_25] : memref<4x128xf32, #tpu.memory_space<vmem>>, vector<1x128xf32>
    tpu.vector_store %arg8[%c1_24, %c0_25], %87 {strides = array<i32>} : memref<4x128xf32, #tpu.memory_space<vmem>>, vector<1x128xf32>,
    %c4_26 = arith.constant 4 : index
    %89 = memref.load %arg6[%c4_26] : memref<8xf32, #tpu.memory_space<smem>>
    %90 = vector.broadcast %89 : f32 to vector<1x128xf32>
    %91 = arith.mulf %46, %90 : vector<1x128xf32>
    %c5_27 = arith.constant 5 : index
    %92 = memref.load %arg6[%c5_27] : memref<8xf32, #tpu.memory_space<smem>>
    %93 = vector.broadcast %92 : f32 to vector<1x128xf32>
    %94 = arith.mulf %66, %93 : vector<1x128xf32>
    %95 = arith.addf %91, %94 : vector<1x128xf32>
    %c2_28 = arith.constant 2 : index
    %96 = memref.load %arg7[%c2_28] : memref<4xf32, #tpu.memory_space<smem>>
    %97 = vector.broadcast %96 : f32 to vector<1x128xf32>
    %98 = arith.addf %95, %97 : vector<1x128xf32>
    %c2_29 = arith.constant 2 : index
    %c0_30 = arith.constant 0 : index
    %99 = vector.load %arg8[%c2_29, %c0_30] : memref<4x128xf32, #tpu.memory_space<vmem>>, vector<1x128xf32>
    tpu.vector_store %arg8[%c2_29, %c0_30], %98 {strides = array<i32>} : memref<4x128xf32, #tpu.memory_space<vmem>>, vector<1x128xf32>,
    %c6_31 = arith.constant 6 : index
    %100 = memref.load %arg6[%c6_31] : memref<8xf32, #tpu.memory_space<smem>>
    %101 = vector.broadcast %100 : f32 to vector<1x128xf32>
    %102 = arith.mulf %46, %101 : vector<1x128xf32>
    %c7_32 = arith.constant 7 : index
    %103 = memref.load %arg6[%c7_32] : memref<8xf32, #tpu.memory_space<smem>>
    %104 = vector.broadcast %103 : f32 to vector<1x128xf32>
    %105 = arith.mulf %66, %104 : vector<1x128xf32>
    %106 = arith.addf %102, %105 : vector<1x128xf32>
    %c3_33 = arith.constant 3 : index
    %107 = memref.load %arg7[%c3_33] : memref<4xf32, #tpu.memory_space<smem>>
    %108 = vector.broadcast %107 : f32 to vector<1x128xf32>
    %109 = arith.addf %106, %108 : vector<1x128xf32>
    %c3_34 = arith.constant 3 : index
    %c0_35 = arith.constant 0 : index
    %110 = vector.load %arg8[%c3_34, %c0_35] : memref<4x128xf32, #tpu.memory_space<vmem>>, vector<1x128xf32>
    tpu.vector_store %arg8[%c3_34, %c0_35], %109 {strides = array<i32>} : memref<4x128xf32, #tpu.memory_space<vmem>>, vector<1x128xf32>,
    return
  }
  func.func @transform_0(%arg0: i32) -> (i32, i32) {
    %c0_i32 = arith.constant 0 : i32
    %c0_i32_0 = arith.constant 0 : i32
    return %arg0, %c0_i32 : i32, i32
  }
  func.func @transform_1(%arg0: i32) -> (i32, i32) {
    %c0_i32 = arith.constant 0 : i32
    %c0_i32_0 = arith.constant 0 : i32
    %c0_i32_1 = arith.constant 0 : i32
    return %c0_i32, %c0_i32_0 : i32, i32
  }
  func.func @transform_2(%arg0: i32) -> i32 {
    %c0_i32 = arith.constant 0 : i32
    %c0_i32_0 = arith.constant 0 : i32
    return %c0_i32 : i32
  }
  func.func @transform_3(%arg0: i32) -> i32 {
    %c0_i32 = arith.constant 0 : i32
    %c0_i32_0 = arith.constant 0 : i32
    return %c0_i32 : i32
  }
  func.func @transform_4(%arg0: i32) -> i32 {
    %c0_i32 = arith.constant 0 : i32
    %c0_i32_0 = arith.constant 0 : i32
    return %c0_i32 : i32
  }
  func.func @transform_5(%arg0: i32) -> i32 {
    %c0_i32 = arith.constant 0 : i32
    %c0_i32_0 = arith.constant 0 : i32
    return %c0_i32 : i32
  }
  func.func @transform_6(%arg0: i32) -> i32 {
    %c0_i32 = arith.constant 0 : i32
    %c0_i32_0 = arith.constant 0 : i32
    return %c0_i32 : i32
  }
  func.func @transform_7(%arg0: i32) -> (i32, i32) {
    %c0_i32 = arith.constant 0 : i32
    %c0_i32_0 = arith.constant 0 : i32
    return %c0_i32, %arg0 : i32, i32
  }
}

</mosaic_0001>

<bundles_post_ra>
// kernel: nn_forward.1
= control target key start
LH: loop header
LB: loop body
LE: loop exit
PB: predicated region body
PF: predicated region fallthrough
CT: control target
= control target key end

     0   :  { %12 = vsyncpa [#allocation4], 0  ;;  %s1939_s0 = inlined_call_operand.vmem [shape: f32[8,16], index: 0, kind: input, shape index: {}]   ;;  %s1940_s1 = inlined_call_operand.vmem [shape: f32[4,16], index: 1, kind: input, shape index: {}]   ;;  %s1941_s2 = inlined_call_operand.vmem [shape: f32[4], index: 2, kind: input, shape index: {}]   ;;  %s1942_s3 = inlined_call_operand.vmem [shape: f32[8], index: 3, kind: input, shape index: {}]   ;;  %s1943_s4 = inlined_call_operand.vmem [shape: f32[2], index: 4, kind: input, shape index: {}]   ;;  %s1944_s5 = inlined_call_operand.vmem [shape: f32[8], index: 5, kind: input, shape index: {}]   ;;  %s1945_s6 = inlined_call_operand.vmem [shape: f32[4], index: 6, kind: input, shape index: {}]   ;;  %s1946_s7 = inlined_call_operand.hbm [shape: f32[4,8], index: 7, kind: output, shape index: {}]  }
   0x1   :  { %13 = vsyncpa [#allocation6], 0 }
   0x2   :  { %14 = vsyncpa [#allocation9], 0  ;;  %s36_s26 = sshll.u32 %s1942_s3, 4  ;;  %s37_s26 = int_to_ptr.vmem [resolvable:$true] %s36_s26 }
   0x3   :  { %15 = vsyncpa [#allocation3], 0  ;;  %s56_s29 = sshll.u32 %s1944_s5, 4  ;;  %s1424_s30 = scalar_lea.vmem %s37_s26, 16  ;;  %s57_s29 = int_to_ptr.vmem [resolvable:$true] %s56_s29 }
   0x4   :  { %p1425_p0 = scmp.ne.s32.totalorder %s37_s26, %s1424_s30  ;;  %p1429_p1 = scmp.lt.s32.totalorder %s37_s26, %s37_s26 }
   0x5   :  { %p1430_p2 = scmp.lt.s32.totalorder %s1424_s30, %s1424_s30 }
   0x7   :  { %p1431_p3 = por %p1430_p2, %p1429_p1 }
   0x9   :  { %p1432_p4 = pnand %p1431_p3, %p1425_p0 }
   0xb   :  { %1435 = shalt.err (!%p1432_p4)
}
   0xc   :  { %s1514_s8 = smov [#allocation5]   ;;  %s1436_s9 = scalar_lea.vmem %s57_s29, 16 }
   0xd   :  { %39 = dma.vmem_to_smem %s37_s26, 16, %s1514_s8, [#allocation6]  }
   0xe   :  { %p1437_p5 = scmp.ne.s32.totalorder %s57_s29, %s1436_s9  ;;  %p1441_p6 = scmp.lt.s32.totalorder %s57_s29, %s57_s29 }
   0xf   :  { %p1442_p7 = scmp.lt.s32.totalorder %s1436_s9, %s1436_s9 }
  0x11   :  { %p1443_p8 = por %p1442_p7, %p1441_p6 }
  0x13   :  { %p1444_p9 = pnand %p1443_p8, %p1437_p5 }
  0x15   :  { %1447 = shalt.err (!%p1444_p9)
}
  0x16   :  { %s1515_s3 = smov [#allocation8]   ;;  %s26_s11 = sshll.u32 %s1941_s2, 4  ;;  %s27_s11 = int_to_ptr.vmem [resolvable:$true] %s26_s11 }
  0x17   :  { %59 = dma.vmem_to_smem %s57_s29, 16, %s1515_s3, [#allocation9]  }
  0x18   :  { %s46_s14 = sshll.u32 %s1943_s4, 4  ;;  %s1448_s15 = scalar_lea.vmem %s27_s11, 16  ;;  %s47_s14 = int_to_ptr.vmem [resolvable:$true] %s46_s14 }
  0x19   :  { %p1449_p10 = scmp.ne.s32.totalorder %s27_s11, %s1448_s15  ;;  %p1453_p11 = scmp.lt.s32.totalorder %s27_s11, %s27_s11 }
  0x1a   :  { %p1454_p12 = scmp.lt.s32.totalorder %s1448_s15, %s1448_s15 }
  0x1c   :  { %p1455_p13 = por %p1454_p12, %p1453_p11 }
  0x1e   :  { %p1456_p0 = pnand %p1455_p13, %p1449_p10 }
  0x20   :  { %1459 = shalt.err (!%p1456_p0)
}
  0x21   :  { %s1516_s16 = smov [#allocation2]   ;;  %s1460_s17 = scalar_lea.vmem %s47_s14, 16 }
  0x22   :  { %29 = dma.vmem_to_smem %s27_s11, 16, %s1516_s16, [#allocation4]  }
  0x23   :  { %p1461_p1 = scmp.ne.s32.totalorder %s47_s14, %s1460_s17  ;;  %p1465_p2 = scmp.lt.s32.totalorder %s47_s14, %s47_s14 }
  0x24   :  { %p1466_p3 = scmp.lt.s32.totalorder %s1460_s17, %s1460_s17 }
  0x26   :  { %p1467_p4 = por %p1466_p3, %p1465_p2 }
  0x28   :  { %p1468_p5 = pnand %p1467_p4, %p1461_p1 }
  0x2a   :  { %1471 = shalt.err (!%p1468_p5)
}
  0x2b   :  { %s1517_s2 = smov [#allocation7]   ;;  %s66_s19 = sshll.u32 %s1945_s6, 4  ;;  %s67_s19 = int_to_ptr.vmem [resolvable:$true] %s66_s19 }
  0x2c   :  { %49 = dma.vmem_to_smem %s47_s14, 16, %s1517_s2, [#allocation6]  }
  0x2d   :  { %s1472_s20 = scalar_lea.vmem %s67_s19, 16  ;;  %p1477_p7 = scmp.lt.s32.totalorder %s67_s19, %s67_s19 }
  0x2e   :  { %p1473_p6 = scmp.ne.s32.totalorder %s67_s19, %s1472_s20  ;;  %p1478_p8 = scmp.lt.s32.totalorder %s1472_s20, %s1472_s20 }
  0x30   :  { %p1479_p9 = por %p1478_p8, %p1477_p7 }
  0x32   :  { %p1480_p10 = pnand %p1479_p9, %p1473_p6 }
  0x34   :  { %1483 = shalt.err (!%p1480_p10)
}
  0x35   :  { %s1518_s21 = smov [#allocation10]  }
  0x36   :  { %69 = dma.vmem_to_smem %s67_s19, 16, %s1518_s21, [#allocation9]  }
  0x37   :  { %1506 = dma.done.wait [#allocation4], 16  }
  0x38   :  { %1507 = vsyncadd [#allocation4], 4294967280 }
  0x39   :  { %1508 = dma.done.wait [#allocation6], 32  }
  0x3a   :  { %1509 = vsyncadd [#allocation6], 4294967264 }
  0x3b   :  { %1510 = dma.done.wait [#allocation9], 32  }
  0x3c   :  { %1511 = vsyncadd [#allocation9], 4294967264 }
  0x3d   :  { %85 = sfence }
  0x3e   :  { %v87_v0 = vld [vmem:[%s1939_s0] sm:$0xff]  ;;  %v88_v1 = vld [vmem:[%s1939_s0 + $0x8] sm:$0xff]  ;;  %vm103_vm0 = vcmask 130048   ;;  %v89_v2 = vld [vmem:[%s1939_s0 + $0x10] sm:$0xff]  ;;  %v1519_v3 = vmov 0.0|0.0   ;;  %vm1520_vm1 = vmmov 0  }
  0x3f   :  { %1262 = vmatprep.subr.bf16.mxu1 %v1519_v3  ;;  %1334 = vmatprep.subr.bf16.mxu0 %v1519_v3  ;;  %v108_v4 = vsel %vm103_vm0, %v87_v0, 0  ;;  %v111_v5 = vsel %vm103_vm0, %v88_v1, 0  ;;  %v90_v6 = vld [vmem:[%s1939_s0 + $0x18] sm:$0xff]  ;;  %v114_v9 = vsel %vm103_vm0, %v89_v2, 0  ;;  %v91_v14 = vld [vmem:[%s1939_s0 + $0x20] sm:$0xff]  ;;  %v92_v15 = vld [vmem:[%s1939_s0 + $0x28] sm:$0xff] }
  0x40   :  { %v156_v7 = vand.u32 4294901760, %v108_v4  ;;  %v159_v8 = vand.u32 4294901760, %v111_v5  ;;  %v117_v10 = vsel %vm103_vm0, %v90_v6, 0  ;;  %v162_v12 = vand.u32 4294901760, %v114_v9  ;;  %v93_v21 = vld [vmem:[%s1939_s0 + $0x30] sm:$0xff]  ;;  %v94_v22 = vld [vmem:[%s1939_s0 + $0x38] sm:$0xff] }
  0x41   :  { %v165_v13 = vand.u32 4294901760, %v117_v10  ;;  %v120_v17 = vsel %vm103_vm0, %v91_v14, 0  ;;  %v123_v18 = vsel %vm103_vm0, %v92_v15, 0  ;;  %v1521_v23 = vmov 0.0   ;;  %v95_v29 = vld [vmem:[%s1939_s0 + $0x40] sm:$0xff]  ;;  %v96_v30 = vld [vmem:[%s1939_s0 + $0x48] sm:$0xff] }
  0x42   :  { %v1596_v11 = vpack.c.bf16 %v159_v8, %v156_v7  ;;  %v168_v19 = vand.u32 4294901760, %v120_v17  ;;  %v171_v20 = vand.u32 4294901760, %v123_v18  ;;  %1084 = vmatprep.mubr.msk.f32.mxu1 %vm1520_vm1, %v1521_v23  ;;  %1189 = vmatprep.mubr.msk.f32.mxu0 %vm1520_vm1, %v1521_v23  ;;  %v126_v25 = vsel %vm103_vm0, %v93_v21, 0  ;;  %v97_v43 = vld [vmem:[%s1939_s0 + $0x50] sm:$0xff]  ;;  %v98_v44 = vld [vmem:[%s1939_s0 + $0x58] sm:$0xff]  ;;  %v99_v60 = vld [vmem:[%s1939_s0 + $0x60] sm:$0xff] }
  0x43   :  { %v1608_v16 = vpack.c.bf16 %v165_v13, %v162_v12  ;;  %v129_v26 = vsel %vm103_vm0, %v94_v22, 0  ;;  %v174_v27 = vand.u32 4294901760, %v126_v25  ;;  %v132_v31 = vsel %vm103_vm0, %v95_v29, 0  ;;  %v100_v61 = vld [vmem:[%s1939_s0 + $0x68] sm:$0xff]  ;;  %s930_s27 = sld [smem:[#allocation2 + $0x2]]  ;;  %s931_s28 = sld [smem:[#allocation2 + $0x3]] }
  0x44   :  { %1264 = vmatpush3.bf16.xpose.msra.mxu1 %v1596_v11  ;;  %1336 = vmatpush3.bf16.xpose.msra.mxu0 %v1596_v11  ;;  %v1626_v24 = vpack.c.bf16 %v171_v20, %v168_v19  ;;  %v177_v28 = vand.u32 4294901760, %v129_v26  ;;  %v135_v33 = vsel %vm103_vm0, %v96_v30, 0  ;;  %v1644_v34 = vsub.f32 %v108_v4, %v156_v7  ;;  %s1861_s29 = sld [smem:[#allocation5 + $0x1]]  ;;  %s1863_s30 = sld [smem:[#allocation5 + $0x2]] }
  0x45   :  { %1265 = vmatprep.subr.bf16.mxu1 %v1519_v3  ;;  %1337 = vmatprep.subr.bf16.mxu0 %v1519_v3  ;;  %v1646_v35 = vsub.f32 %v111_v5, %v159_v8  ;;  %v1648_v36 = vsub.f32 %v114_v9, %v162_v12  ;;  %v1650_v37 = vsub.f32 %v117_v10, %v165_v13  ;;  %v180_v38 = vand.u32 4294901760, %v132_v31  ;;  %v86_v5 = vld [vmem:[%s1940_s1] sm:$0xf]  ;;  %v101_v8 = vld [vmem:[%s1939_s0 + $0x70] sm:$0xff]  ;;  %v102_v9 = vld [vmem:[%s1939_s0 + $0x78] sm:$0xff]  ;;  %s796_s0 = sld [smem:[#allocation2]] }
  0x46   :  { %v1641_v32 = vpack.c.bf16 %v177_v28, %v174_v27  ;;  %v1652_v39 = vsub.f32 %v120_v17, %v168_v19  ;;  %v1654_v40 = vsub.f32 %v123_v18, %v171_v20  ;;  %v1656_v41 = vsub.f32 %v126_v25, %v174_v27  ;;  %s929_s1 = sld [smem:[#allocation2 + $0x1]]  ;;  %s1865_s8 = sld [smem:[#allocation5 + $0x5]] }
  0x47   :  { %v183_v42 = vand.u32 4294901760, %v135_v33  ;;  %v1665_v45 = vsub.f32 %v129_v26, %v177_v28  ;;  %v1668_v46 = vsub.f32 %v132_v31, %v180_v38  ;;  %v1311_v47 = vpack.c.bf16 %v1646_v35, %v1644_v34  ;;  %s1867_s9 = sld [smem:[#allocation5 + $0x6]]  ;;  %s1869_s3 = sld [smem:[#allocation5]] }
  0x48   :  { %v1314_v49 = vpack.c.bf16 %v1650_v37, %v1648_v36  ;;  %v1317_v50 = vpack.c.bf16 %v1654_v40, %v1652_v39  ;;  %v138_v51 = vsel %vm103_vm0, %v97_v43, 0  ;;  %v141_v52 = vsel %vm103_vm0, %v98_v44, 0  ;;  %s1871_s5 = sld [smem:[#allocation5 + $0x3]]  ;;  %s1873_s10 = sld [smem:[#allocation5 + $0x4]] }
  0x49   :  { %v1674_v48 = vsub.f32 %v135_v33, %v183_v42  ;;  %v1320_v53 = vpack.c.bf16 %v1665_v45, %v1656_v41  ;;  %v1686_v55 = vpack.c.bf16 %v183_v42, %v180_v38  ;;  %v186_v56 = vand.u32 4294901760, %v138_v51  ;;  %s1875_s11 = sld [smem:[#allocation5 + $0x7]]  ;;  %s1883_s12 = sld [smem:[#allocation7]] }
  0x4a   :  { %v189_v57 = vand.u32 4294901760, %v141_v52  ;;  %v144_v63 = vsel %vm103_vm0, %v99_v60, 0  ;;  %v147_v0 = vsel %vm103_vm0, %v100_v61, 0  ;;  %v105_v10 = vsel %vm103_vm0, %v86_v5, 0  ;;  %s1887_s13 = sld [smem:[#allocation7 + $0x1]]  ;;  %s1889_s14 = sld [smem:[#allocation8]] }
  0x4b   :  { %v1323_v54 = vpack.c.bf16 %v1674_v48, %v1668_v46  ;;  %v1688_v58 = vsub.f32 %v138_v51, %v186_v56  ;;  %v192_v2 = vand.u32 4294901760, %v144_v63  ;;  %v195_v4 = vand.u32 4294901760, %v147_v0  ;;  %s1891_s15 = sld [smem:[#allocation8 + $0x1]]  ;;  %s1893_s16 = sld [smem:[#allocation8 + $0x2]] }
  0x4c   :  { %1267 = vmatpush3.bf16.xpose.msra.mxu1 %v1608_v16  ;;  %1339 = vmatpush3.bf16.xpose.msra.mxu0 %v1608_v16  ;;  %v1690_v59 = vsub.f32 %v141_v52, %v189_v57  ;;  %v1706_v1 = vpack.c.bf16 %v189_v57, %v186_v56  ;;  %v150_v13 = vsel %vm103_vm0, %v101_v8, 0  ;;  %v153_v14 = vsel %vm103_vm0, %v102_v9, 0  ;;  %s1895_s17 = sld [smem:[#allocation8 + $0x3]]  ;;  %s1897_s2 = sld [smem:[#allocation8 + $0x4]] }
  0x4d   :  { %1268 = vmatprep.subr.bf16.mxu1 %v1519_v3  ;;  %1340 = vmatprep.subr.bf16.mxu0 %v1519_v3  ;;  %v1711_v6 = vsub.f32 %v144_v63, %v192_v2  ;;  %v1713_v7 = vsub.f32 %v147_v0, %v195_v4  ;;  %v1730_v15 = vand.u32 4294901760, %v105_v10  ;;  %v1732_v17 = vpack.c.bf16 %v195_v4, %v192_v2  ;;  %s1899_s4 = sld [smem:[#allocation8 + $0x6]]  ;;  %s1901_s18 = sld [smem:[#allocation8 + $0x5]] }
  0x4e   :  { %v1326_v62 = vpack.c.bf16 %v1690_v59, %v1688_v58  ;;  %v198_v18 = vand.u32 4294901760, %v150_v13  ;;  %v201_v19 = vand.u32 4294901760, %v153_v14  ;;  %v249_v25 = vand.u32 4294901760, %v1644_v34  ;;  %s1903_s19 = sld [smem:[#allocation8 + $0x7]]  ;;  %s1906_s20 = sld [smem:[#allocation10]] }
  0x4f   :  { %v1329_v12 = vpack.c.bf16 %v1713_v7, %v1711_v6  ;;  %v1739_v22 = vsub.f32 %v105_v10, %v1730_v15  ;;  %v256_v26 = vand.u32 4294901760, %v1646_v35  ;;  %v263_v43 = vand.u32 4294901760, %v1648_v36  ;;  %s1908_s21 = sld [smem:[#allocation10 + $0x1]]  ;;  %s1911_s22 = sld [smem:[#allocation10 + $0x2]] }
  0x50   :  { %v1734_v20 = vsub.f32 %v150_v13, %v198_v18  ;;  %v1736_v21 = vsub.f32 %v153_v14, %v201_v19  ;;  %v1750_v29 = vpack.c.bf16 %v201_v19, %v198_v18  ;;  %v250_v30 = vsub.f32 %v1644_v34, %v249_v25  ;;  %s1913_s23 = sld [smem:[#allocation10 + $0x3]]  ;;  %s1522_s6 = smov [#allocation11]  }
  0x51   :  { %v238_v28 = vand.u32 4294901760, %v1739_v22  ;;  %v257_v31 = vsub.f32 %v1646_v35, %v256_v26  ;;  %v270_v44 = vand.u32 4294901760, %v1650_v37  ;;  %v1359_v56 = vpack.c.bf16 %v256_v26, %v249_v25  ;;  %s918_s24 = sshll.u32 %s1522_s6, 4  ;;  %s919_s24 = int_to_ptr.vmem [resolvable:$true] %s918_s24 }
  0x52   :  { %v1332_v27 = vpack.c.bf16 %v1736_v21, %v1734_v20  ;;  %v251_v38 = vand.u32 4294901760, %v250_v30  ;;  %v264_v57 = vsub.f32 %v1648_v36, %v263_v43  ;;  %v277_v0 = vand.u32 4294901760, %v1652_v39  ;;  %s1484_s25 = scalar_lea.vmem %s919_s24, 64  ;;  %p1489_p12 = scmp.lt.s32.totalorder %s919_s24, %s919_s24 }
  0x53   :  { %v239_v33 = vsub.f32 %v1739_v22, %v238_v28  ;;  %v258_v42 = vand.u32 4294901760, %v257_v31  ;;  %v271_v60 = vsub.f32 %v1650_v37, %v270_v44  ;;  %v284_v2 = vand.u32 4294901760, %v1654_v40  ;;  %p1485_p11 = scmp.ne.s32.totalorder %s919_s24, %s1484_s25  ;;  %p1490_p13 = scmp.lt.s32.totalorder %s1484_s25, %s1484_s25 }
  0x54   :  { %1270 = vmatpush3.bf16.xpose.msra.mxu1 %v1626_v24  ;;  %1342 = vmatpush3.bf16.xpose.msra.mxu0 %v1626_v24  ;;  %v265_v61 = vand.u32 4294901760, %v264_v57  ;;  %v1362_v5 = vpack.c.bf16 %v270_v44, %v263_v43  ;;  %v278_v8 = vsub.f32 %v1652_v39, %v277_v0  ;;  %v291_v14 = vand.u32 4294901760, %v1656_v41 }
  0x55   :  { %1271 = vmatprep.subr.bf16.mxu1 %v1519_v3  ;;  %1343 = vmatprep.subr.bf16.mxu0 %v1519_v3  ;;  %v240_v51 = vand.u32 4294901760, %v239_v33  ;;  %v1287_v52 = vpack.c.bf16 %v258_v42, %v251_v38  ;;  %v272_v63 = vand.u32 4294901760, %v271_v60  ;;  %v285_v9 = vsub.f32 %v1654_v40, %v284_v2  ;;  %p1491_p0 = por %p1490_p13, %p1489_p12 }
  0x56   :  { %v279_v10 = vand.u32 4294901760, %v278_v8  ;;  %v298_v18 = vand.u32 4294901760, %v1665_v45  ;;  %v1365_v25 = vpack.c.bf16 %v284_v2, %v277_v0  ;;  %v292_v26 = vsub.f32 %v1656_v41, %v291_v14 }
  0x57   :  { %v1290_v4 = vpack.c.bf16 %v272_v63, %v265_v61  ;;  %v286_v13 = vand.u32 4294901760, %v285_v9  ;;  %v305_v33 = vand.u32 4294901760, %v1668_v46  ;;  %v312_v38 = vand.u32 4294901760, %v1674_v48  ;;  %p1492_p1 = pnand %p1491_p0, %p1485_p11 }
  0x58   :  { %v293_v30 = vand.u32 4294901760, %v292_v26  ;;  %v1368_v43 = vpack.c.bf16 %v298_v18, %v291_v14  ;;  %v319_v57 = vand.u32 4294901760, %v1688_v58  ;;  %v326_v60 = vand.u32 4294901760, %v1690_v59 }
  0x59   :  { %v1293_v19 = vpack.c.bf16 %v286_v13, %v279_v10  ;;  %v306_v44 = vsub.f32 %v1668_v46, %v305_v33  ;;  %v1371_v63 = vpack.c.bf16 %v312_v38, %v305_v33  ;;  %v333_v8 = vand.u32 4294901760, %v1711_v6 }
  0x5a   :  { %v320_v0 = vsub.f32 %v1688_v58, %v319_v57  ;;  %v327_v2 = vsub.f32 %v1690_v59, %v326_v60  ;;  %v340_v9 = vand.u32 4294901760, %v1713_v7  ;;  %v1374_v13 = vpack.c.bf16 %v326_v60, %v319_v57 }
  0x5b   :  { %v334_v14 = vsub.f32 %v1711_v6, %v333_v8  ;;  %v347_v26 = vand.u32 4294901760, %v1734_v20  ;;  %v823_v46 = vstv %s1863_s30  ;;  %v830_v58 = vstv %s1871_s5 }
  0x5c   :  { %1273 = vmatpush3.bf16.xpose.msra.mxu1 %v1641_v32  ;;  %1345 = vmatpush3.bf16.xpose.msra.mxu0 %v1641_v32  ;;  %v858_v6 = vstv %s1875_s11 }
  0x5d   :  { %1274 = vmatprep.subr.bf16.mxu1 %v1519_v3  ;;  %1346 = vmatprep.subr.bf16.mxu0 %v1519_v3  ;;  %v348_v33 = vsub.f32 %v1734_v20, %v347_v26 }
  0x64   :  { %1276 = vmatpush3.bf16.xpose.msra.mxu1 %v1686_v55  ;;  %1348 = vmatpush3.bf16.xpose.msra.mxu0 %v1686_v55 }
  0x65   :  { %1277 = vmatprep.subr.bf16.mxu1 %v1519_v3  ;;  %1349 = vmatprep.subr.bf16.mxu0 %v1519_v3 }
  0x6c   :  { %1279 = vmatpush3.bf16.xpose.msra.mxu1 %v1706_v1  ;;  %1351 = vmatpush3.bf16.xpose.msra.mxu0 %v1706_v1 }
  0x6d   :  { %1280 = vmatprep.subr.bf16.mxu1 %v1519_v3  ;;  %1352 = vmatprep.subr.bf16.mxu0 %v1519_v3 }
  0x74   :  { %1282 = vmatpush3.bf16.xpose.msra.mxu1 %v1732_v17  ;;  %1354 = vmatpush3.bf16.xpose.msra.mxu0 %v1732_v17 }
  0x75   :  { %1283 = vmatprep.subr.bf16.mxu1 %v1519_v3  ;;  %1355 = vmatprep.subr.bf16.mxu0 %v1519_v3 }
  0x7c   :  { %1285 = vmatpush3.bf16.xpose.msra.mxu1 %v1750_v29  ;;  %1357 = vmatpush3.bf16.xpose.msra.mxu0 %v1750_v29 }
  0x7d   :  { %1286 = vmatprep.subr.bf16.mxu1 %v1519_v3  ;;  %1358 = vmatprep.subr.bf16.mxu0 %v1519_v3 }
  0x83   :  { %1085 = vmatmul.mubr.f32.vlgmr.msra.gmra.mrb[0].mxu1 %v240_v51  ;;  %1190 = vmatmul.mubr.f32.vlgmr.msra.gmra.mrb[0].mxu0 %v238_v28  ;;  %v299_v28 = vsub.f32 %v1665_v45, %v298_v18  ;;  %v313_v51 = vsub.f32 %v1674_v48, %v312_v38  ;;  %v341_v18 = vsub.f32 %v1713_v7, %v340_v9  ;;  %v816_v45 = vstv %s1861_s29 }
  0x84   :  { %1288 = vmatpush3.bf16.xpose.msra.mxu1 %v1287_v52  ;;  %1360 = vmatpush3.bf16.xpose.msra.mxu0 %v1359_v56  ;;  %v307_v52 = vand.u32 4294901760, %v306_v44  ;;  %v851_v48 = vstv %s1867_s9 }
  0x85   :  { %1289 = vmatprep.subr.bf16.mxu1 %v1519_v3  ;;  %1361 = vmatprep.subr.bf16.mxu0 %v1519_v3  ;;  %v300_v31 = vand.u32 4294901760, %v299_v28  ;;  %v314_v56 = vand.u32 4294901760, %v313_v51  ;;  %v354_v28 = vand.u32 4294901760, %v1736_v21 }
  0x86   :  { %1119 = vmatprep.mubr.msk.f32.mxu1 %vm1520_vm1, %v1521_v23  ;;  %1224 = vmatprep.mubr.msk.f32.mxu0 %vm1520_vm1, %v1521_v23 }
  0x87   :  { %v1296_v42 = vpack.c.bf16 %v300_v31, %v293_v30  ;;  %v1299_v61 = vpack.c.bf16 %v314_v56, %v307_v52  ;;  %v1377_v31 = vpack.c.bf16 %v340_v9, %v333_v8  ;;  %v355_v38 = vsub.f32 %v1736_v21, %v354_v28 }
  0x88   :  { %v1380_v51 = vpack.c.bf16 %v354_v28, %v347_v26  ;;  %v883_v28 = vstv %s1895_s17 }
  0x8c   :  { %1291 = vmatpush3.bf16.xpose.msra.mxu1 %v1290_v4  ;;  %1363 = vmatpush3.bf16.xpose.msra.mxu0 %v1362_v5  ;;  %v321_v4 = vand.u32 4294901760, %v320_v0  ;;  %v328_v5 = vand.u32 4294901760, %v327_v2 }
  0x8d   :  { %1292 = vmatprep.subr.bf16.mxu1 %v1519_v3  ;;  %1364 = vmatprep.subr.bf16.mxu0 %v1519_v3 }
  0x8e   :  { %v1302_v10 = vpack.c.bf16 %v328_v5, %v321_v4  ;;  %v865_v5 = vstv %s1887_s13 }
  0x94   :  { %1294 = vmatpush3.bf16.xpose.msra.mxu1 %v1293_v19  ;;  %1366 = vmatpush3.bf16.xpose.msra.mxu0 %v1365_v25  ;;  %v335_v19 = vand.u32 4294901760, %v334_v14  ;;  %v342_v25 = vand.u32 4294901760, %v341_v18  ;;  %v880_v18 = vstv %s1893_s16 }
  0x95   :  { %1295 = vmatprep.subr.bf16.mxu1 %v1519_v3  ;;  %1367 = vmatprep.subr.bf16.mxu0 %v1519_v3 }
  0x96   :  { %v1305_v30 = vpack.c.bf16 %v342_v25, %v335_v19  ;;  %v891_v19 = vstv %s1897_s2  ;;  %v902_v25 = vstv %s1899_s4 }
  0x9c   :  { %1297 = vmatpush3.bf16.xpose.msra.mxu1 %v1296_v42  ;;  %1369 = vmatpush3.bf16.xpose.msra.mxu0 %v1368_v43  ;;  %v349_v42 = vand.u32 4294901760, %v348_v33  ;;  %v356_v43 = vand.u32 4294901760, %v355_v38 }
  0x9d   :  { %1298 = vmatprep.subr.bf16.mxu1 %v1519_v3  ;;  %1370 = vmatprep.subr.bf16.mxu0 %v1519_v3 }
  0x9e   :  { %v1308_v44 = vpack.c.bf16 %v356_v43, %v349_v42 }
  0xa4   :  { %1300 = vmatpush3.bf16.xpose.msra.mxu1 %v1299_v61  ;;  %1372 = vmatpush3.bf16.xpose.msra.mxu0 %v1371_v63  ;;  %v837_v63 = vstv %s1883_s12 }
  0xa5   :  { %1301 = vmatprep.subr.bf16.mxu1 %v1519_v3  ;;  %1373 = vmatprep.subr.bf16.mxu0 %v1519_v3 }
  0xac   :  { %1303 = vmatpush3.bf16.xpose.msra.mxu1 %v1302_v10  ;;  %1375 = vmatpush3.bf16.xpose.msra.mxu0 %v1374_v13  ;;  %v869_v10 = vstv %s1889_s14  ;;  %v872_v13 = vstv %s1891_s15 }
  0xad   :  { %1304 = vmatprep.subr.bf16.mxu1 %v1519_v3  ;;  %1376 = vmatprep.subr.bf16.mxu0 %v1519_v3 }
  0xb4   :  { %1306 = vmatpush3.bf16.xpose.msra.mxu1 %v1305_v30  ;;  %1378 = vmatpush3.bf16.xpose.msra.mxu0 %v1377_v31  ;;  %v894_v30 = vstv %s1901_s18  ;;  %v905_v31 = vstv %s1903_s19 }
  0xb5   :  { %1307 = vmatprep.subr.bf16.mxu1 %v1519_v3  ;;  %1379 = vmatprep.subr.bf16.mxu0 %v1519_v3 }
  0xbc   :  { %1309 = vmatpush3.bf16.xpose.msra.mxu1 %v1308_v44  ;;  %1381 = vmatpush3.bf16.xpose.msra.mxu0 %v1380_v51 }
  0xbd   :  { %1310 = vmatprep.subr.bf16.mxu1 %v1519_v3  ;;  %1382 = vmatprep.subr.bf16.mxu0 %v1519_v3 }
  0xc3   :  { %1120 = vmatmul.mubr.f32.vlgmr.msra.gmra.mrb[0].mxu1 %v1730_v15  ;;  %1225 = vmatmul.mubr.f32.vlgmr.msra.gmra.mrb[0].mxu0 %v1730_v15 }
  0xc4   :  { %1312 = vmatpush3.bf16.xpose.msra.mxu1 %v1311_v47  ;;  %1384 = vmatpush3.bf16.xpose.msra.mxu0 %v1596_v11  ;;  %v844_v47 = vstv %s1865_s8 }
  0xc5   :  { %1313 = vmatprep.subr.bf16.mxu1 %v1519_v3  ;;  %1385 = vmatprep.subr.bf16.mxu0 %v1519_v3 }
  0xc6   :  { %1154 = vmatprep.mubr.msk.f32.mxu1 %vm1520_vm1, %v1521_v23  ;;  %1259 = vmatprep.mubr.msk.f32.mxu0 %vm1520_vm1, %v1521_v23  ;;  %v801_v23 = vstv %s929_s1 }
  0xcc   :  { %1315 = vmatpush3.bf16.xpose.msra.mxu1 %v1314_v49  ;;  %1387 = vmatpush3.bf16.xpose.msra.mxu0 %v1608_v16  ;;  %v797_v16 = vstv %s796_s0 }
  0xcd   :  { %1316 = vmatprep.subr.bf16.mxu1 %v1519_v3  ;;  %1388 = vmatprep.subr.bf16.mxu0 %v1519_v3 }
  0xd4   :  { %1318 = vmatpush3.bf16.xpose.msra.mxu1 %v1317_v50  ;;  %1390 = vmatpush3.bf16.xpose.msra.mxu0 %v1626_v24  ;;  %v805_v24 = vstv %s930_s27 }
  0xd5   :  { %1319 = vmatprep.subr.bf16.mxu1 %v1519_v3  ;;  %1391 = vmatprep.subr.bf16.mxu0 %v1519_v3 }
  0xdc   :  { %1321 = vmatpush3.bf16.xpose.msra.mxu1 %v1320_v53  ;;  %1393 = vmatpush3.bf16.xpose.msra.mxu0 %v1641_v32  ;;  %v809_v32 = vstv %s931_s28 }
  0xdd   :  { %1322 = vmatprep.subr.bf16.mxu1 %v1519_v3  ;;  %1394 = vmatprep.subr.bf16.mxu0 %v1519_v3 }
  0xe4   :  { %1324 = vmatpush3.bf16.xpose.msra.mxu1 %v1323_v54  ;;  %1396 = vmatpush3.bf16.xpose.msra.mxu0 %v1686_v55  ;;  %v813_v55 = vstv %s1869_s3 }
  0xe5   :  { %1325 = vmatprep.subr.bf16.mxu1 %v1519_v3  ;;  %1397 = vmatprep.subr.bf16.mxu0 %v1519_v3 }
  0xec   :  { %1327 = vmatpush3.bf16.xpose.msra.mxu1 %v1326_v62  ;;  %1399 = vmatpush3.bf16.xpose.msra.mxu0 %v1706_v1  ;;  %v841_v1 = vstv %s1873_s10 }
  0xed   :  { %1328 = vmatprep.subr.bf16.mxu1 %v1519_v3  ;;  %1400 = vmatprep.subr.bf16.mxu0 %v1519_v3 }
  0xf4   :  { %1330 = vmatpush3.bf16.xpose.msra.mxu1 %v1329_v12  ;;  %1402 = vmatpush3.bf16.xpose.msra.mxu0 %v1732_v17 }
  0xf5   :  { %1331 = vmatprep.subr.bf16.mxu1 %v1519_v3  ;;  %1403 = vmatprep.subr.bf16.mxu0 %v1519_v3 }
  0xfc   :  { %1333 = vmatpush3.bf16.xpose.msra.mxu1 %v1332_v27  ;;  %1405 = vmatpush3.bf16.xpose.msra.mxu0 %v1750_v29 }
 0x103   :  { %1155 = vmatmul.mubr.f32.vlgmr.msra.gmra.mrb[0].mxu1 %v1739_v22  ;;  %1260 = vmatmul.mubr.f32.vlgmr.msra.gmra.mrb[0].mxu0 %v1730_v15 }
 0x1d6   :  { %v497_v3 = vpop.f32.mrb[0].mxu1  ;;  %v792_v11 = vpop.f32.mrb[0].mxu0 }
 0x1d7   :  { %v1406_v34 = vadd.f32 %v792_v11, %v497_v3  ;;  %v1156_v35 = vpop.f32.mrb[1].mxu1  ;;  %v1261_v36 = vpop.f32.mrb[1].mxu0 }
 0x1d9   :  { %v798_v37 = vadd.f32 %v1406_v34, %v797_v16  ;;  %v802_v39 = vadd.f32 %v1406_v34, %v801_v23  ;;  %v806_v40 = vadd.f32 %v1406_v34, %v805_v24  ;;  %v810_v41 = vadd.f32 %v1406_v34, %v809_v32 }
 0x1da   :  { %v876_v23 = vstv %s1906_s20  ;;  %v887_v24 = vstv %s1908_s21  ;;  %v898_v32 = vstv %s1911_s22  ;;  %v909_v34 = vstv %s1913_s23 }
 0x1db   :  { %v799_v49 = vmax.f32 %v798_v37, 0.0  ;;  %v803_v50 = vmax.f32 %v802_v39, 0.0  ;;  %v807_v53 = vmax.f32 %v806_v40, 0.0  ;;  %v811_v54 = vmax.f32 %v810_v41, 0.0 }
 0x1dd   :  { %v817_v59 = vmul.f32 %v816_v45, %v803_v50  ;;  %v824_v62 = vmul.f32 %v823_v46, %v807_v53  ;;  %v845_v7 = vmul.f32 %v844_v47, %v803_v50  ;;  %v852_v12 = vmul.f32 %v851_v48, %v807_v53 }
 0x1de   :  { %v814_v15 = vmul.f32 %v813_v55, %v799_v49  ;;  %v831_v20 = vmul.f32 %v830_v58, %v811_v54  ;;  %v842_v21 = vmul.f32 %v841_v1, %v799_v49  ;;  %v859_v27 = vmul.f32 %v858_v6, %v811_v54 }
 0x1df   :  { %v819_v17 = vrot.slane %v817_v59, 1  ;;  %v847_v22 = vrot.slane %v845_v7, 1  ;;  %v826_v52 = vrot.slane %v824_v62, 2  ;;  %v854_v57 = vrot.slane %v852_v12, 2 }
 0x1e0   :  { %v833_v61 = vrot.slane %v831_v20, 3  ;;  %v861_v2 = vrot.slane %v859_v27, 3 }
 0x1e1   :  { %v821_v29 = vadd.f32 %v819_v17, %v814_v15  ;;  %v849_v56 = vadd.f32 %v847_v22, %v842_v21 }
 0x1e3   :  { %v828_v60 = vadd.f32 %v826_v52, %v821_v29  ;;  %v856_v0 = vadd.f32 %v854_v57, %v849_v56 }
 0x1e5   :  { %v835_v4 = vadd.f32 %v833_v61, %v828_v60  ;;  %v863_v8 = vadd.f32 %v861_v2, %v856_v0 }
 0x1e7   :  { %v838_v9 = vadd.f32 %v837_v63, %v835_v4  ;;  %v866_v14 = vadd.f32 %v865_v5, %v863_v8 }
 0x1e9   :  { %v839_v26 = vmax.f32 %v838_v9, 0.0  ;;  %v867_v33 = vmax.f32 %v866_v14, 0.0 }
 0x1eb   :  { %v870_v38 = vmul.f32 %v869_v10, %v839_v26  ;;  %v881_v42 = vmul.f32 %v880_v18, %v839_v26  ;;  %v892_v43 = vmul.f32 %v891_v19, %v839_v26  ;;  %v903_v44 = vmul.f32 %v902_v25, %v839_v26 }
 0x1ec   :  { %v873_v51 = vmul.f32 %v872_v13, %v867_v33  ;;  %v884_v3 = vmul.f32 %v883_v28, %v867_v33  ;;  %v895_v11 = vmul.f32 %v894_v30, %v867_v33  ;;  %v906_v16 = vmul.f32 %v905_v31, %v867_v33 }
 0x1ee   :  { %v874_v35 = vadd.f32 %v873_v51, %v870_v38  ;;  %v885_v36 = vadd.f32 %v884_v3, %v881_v42  ;;  %v896_v37 = vadd.f32 %v895_v11, %v892_v43  ;;  %v907_v39 = vadd.f32 %v906_v16, %v903_v44 }
 0x1f0   :  { %v877_v40 = vadd.f32 %v876_v23, %v874_v35  ;;  %v888_v41 = vadd.f32 %v887_v24, %v885_v36  ;;  %v899_v45 = vadd.f32 %v898_v32, %v896_v37  ;;  %v910_v46 = vadd.f32 %v909_v34, %v907_v39 }
 0x1f2   :  { %878 = vst [vmem:[#allocation11] sm:$0x1] %v877_v40  ;;  %889 = vst [vmem:[#allocation11 + $0x1] sm:$0x1] %v888_v41 }
 0x1f3   :  { %900 = vst [vmem:[#allocation11 + $0x2] sm:$0x1] %v899_v45  ;;  %911 = vst [vmem:[#allocation11 + $0x3] sm:$0x1] %v910_v46 }
 0x1f4   :  { %1495 = shalt.err (!%p1492_p1)
}
 0x1f5   :  { %s1496_s1 = scalar_lea.hbm %s1946_s7, 64 }
 0x1f6   :  { %p1497_p2 = scmp.ne.s32.totalorder %s1946_s7, %s1496_s1  ;;  %p1500_p3 = scmp.lt.u32.totalorder %s1496_s1, %s1946_s7 }
 0x1f8   :  { %p1502_p4 = pnand %p1500_p3, %p1497_p2 }
 0x1fa   :  { %1505 = shalt.err (!%p1502_p4)
}
 0x1fb   :  { %921 = dma.vmem_to_hbm [thread:$0]  %s919_s24, 64, %s1946_s7, [#allocation3]  }
 0x1fc   :  { %1512 = dma.done.wait [#allocation3], 64  }
 0x1fd   :  { %1513 = vsyncadd [#allocation3], 4294967232 }
 0x1fe   :  { %925 = vsyncpa [#allocation3], 1 }
 0x1ff   :  { %926 = vsyncpa [#allocation4], 1 }
 0x200   :  { %927 = vsyncpa [#allocation6], 1 }
 0x201   :  { %928 = vsyncpa [#allocation9], 1 }

</bundles_post_ra>
